<compile_context>
chip_gen: v7x
topology: tpu7x:2x2x1
jax: 0.10.0
libtpu: 0.0.40
codegen_flags: <defaults>
</compile_context>

<pallas_src>
import functools

import jax
import jax.numpy as jnp
from jax.experimental import pallas as pl
from jax.experimental.pallas import tpu as pltpu


NUM_HIDDEN_LAYERS = 6   # 6 x (Linear(64,64) + ReLU), then Linear(64,3)
IN_DIM = 64
ALPHA_COL = 56          # alpha = x[:, 56:59], beta = x[:, 59:62]


# ----------------------------------------------------------------------------
# Encoding glue (plain JAX; tiny tensors, VPU/EUP work handled by XLA).
# ----------------------------------------------------------------------------
def to_sphe_coords(v):
    """[B, 3] direction -> [B, 2] spherical coords normalized to [0, 1]."""
    vn = v / (jnp.linalg.norm(v, axis=-1, keepdims=True) + 1e-8)
    theta = jnp.arccos(jnp.clip(vn[:, 2], -1.0, 1.0))          # [0, pi]
    phi = jnp.arctan2(vn[:, 1], vn[:, 0])                      # [-pi, pi]
    return jnp.stack([theta / jnp.pi, phi / (2.0 * jnp.pi) + 0.5], axis=-1)


def freq_embed(x, n_freqs=6):
    """Frequency (sin/cos) embedding: [B, 3] -> [B, 3 * 2 * n_freqs] = [B, 36]."""
    freqs = (2.0 ** jnp.arange(n_freqs, dtype=x.dtype)) * jnp.pi     # [L]
    xf = x[..., None] * freqs                                        # [B, 3, L]
    emb = jnp.concatenate([jnp.sin(xf), jnp.cos(xf)], axis=-1)       # [B, 3, 2L]
    return emb.reshape(x.shape[0], -1)


def one_blob_embed(x, n_bins=4):
    """One-blob (Gaussian kernel) embedding: [B, D] -> [B, D * n_bins]."""
    centers = (jnp.arange(n_bins, dtype=x.dtype) + 0.5) / n_bins     # [K]
    sigma = 1.0 / n_bins
    k = jnp.exp(-0.5 * ((x[..., None] - centers) / sigma) ** 2)      # [B, D, K]
    return k.reshape(x.shape[0], -1)


def build_mlp_input(p, wi, n, alpha, beta, r):
    """Reproduces the torch.concat([...]) of NRC_Core.forward -> [B, 64]."""
    pieces = [
        freq_embed(p),                               # 36  -> cols  0:36
        one_blob_embed(to_sphe_coords(wi)),          # 8   -> cols 36:44
        one_blob_embed(to_sphe_coords(n)),           # 8   -> cols 44:52
        one_blob_embed(1.0 - jnp.exp(-r)),           # 4   -> cols 52:56
        alpha,                                       # 3   -> cols 56:59
        beta,                                        # 3   -> cols 59:62
        jnp.ones_like(p[:, :2]),                     # 2   -> cols 62:64 (implicit bias)
    ]
    x = jnp.concatenate(pieces, axis=-1)
    assert x.shape[-1] == IN_DIM, x.shape
    return x


# ----------------------------------------------------------------------------
# Pallas kernel: 7-layer bias-free MLP + reflectance factorization.
# ----------------------------------------------------------------------------
def nrc_mlp_kernel(x_ref, w_hid_ref, w_out_ref, o_ref, *, ref_factor):
    # x_ref:     [TB, 64]   bf16 encoded inputs (feature on lanes)
    # w_hid_ref: [6, 64, 64] bf16 stacked hidden weights (acts @ W layout)
    # w_out_ref: [64, 3]     bf16 output projection
    # o_ref:     [TB, 3]     f32
    x = x_ref[...]                                   # bf16 [TB, 64]
    h = x
    for l in range(NUM_HIDDEN_LAYERS):               # static unroll: 6 MXU matmuls
        acc = jnp.dot(h, w_hid_ref[l], preferred_element_type=jnp.float32)
        h = jnp.maximum(acc, 0.0).astype(jnp.bfloat16)   # ReLU in f32, re-feed MXU in bf16
    out = jnp.dot(h, w_out_ref[...], preferred_element_type=jnp.float32)  # [TB, 3] f32
    if ref_factor:
        # alpha/beta are already columns of the encoded input -> no separate
        # lane-sparse [B,3] scale stream; just a couple of VPU ops in VMEM.
        scale = (x[:, ALPHA_COL:ALPHA_COL + 3].astype(jnp.float32)
                 + x[:, ALPHA_COL + 3:ALPHA_COL + 6].astype(jnp.float32))
        out = out * scale
    o_ref[...] = out.astype(o_ref.dtype)


def _pick_block_b(batch):
    """Largest power-of-two row tile <= 4096 that divides the batch."""
    for cand in (4096, 2048, 1024, 512, 256, 128, 64, 32, 16, 8):
        if batch % cand == 0:
            return cand
    return batch


@functools.partial(jax.jit, static_argnames=("ref_factor", "block_b"))
def nrc_core_forward(p, wi, n, alpha, beta, r, w_hid, w_out,
                     ref_factor=True, block_b=None):
    # Encode in XLA (cheap), stream the MLP input to the kernel in bf16.
    x = build_mlp_input(p, wi, n, alpha, beta, r).astype(jnp.bfloat16)   # [B, 64]
    w_hid = w_hid.astype(jnp.bfloat16)
    w_out = w_out.astype(jnp.bfloat16)

    B = x.shape[0]
    tb = _pick_block_b(B) if block_b is None else block_b
    assert B % tb == 0, (B, tb)

    flops = 2 * B * (NUM_HIDDEN_LAYERS * 64 * 64 + 64 * 3)
    bytes_accessed = (x.size * x.dtype.itemsize
                      + w_hid.size * w_hid.dtype.itemsize
                      + w_out.size * w_out.dtype.itemsize
                      + B * 3 * 4)

    out = pl.pallas_call(
        functools.partial(nrc_mlp_kernel, ref_factor=ref_factor),
        out_shape=jax.ShapeDtypeStruct((B, 3), jnp.float32),
        grid_spec=pltpu.PrefetchScalarGridSpec(
            num_scalar_prefetch=0,
            grid=(B // tb,),
            in_specs=[
                pl.BlockSpec((tb, IN_DIM), lambda i: (i, 0)),        # x tile (pipelined)
                pl.BlockSpec((NUM_HIDDEN_LAYERS, 64, 64),
                             lambda i: (0, 0, 0)),                   # weights, resident
                pl.BlockSpec((64, 3), lambda i: (0, 0)),             # out proj, resident
            ],
            out_specs=pl.BlockSpec((tb, 3), lambda i: (i, 0)),
        ),
        compiler_params=pltpu.CompilerParams(
            dimension_semantics=("parallel",),
        ),
        cost_estimate=pl.CostEstimate(
            flops=flops, transcendentals=0, bytes_accessed=bytes_accessed),
    )(x, w_hid, w_out)
    return out


# ----------------------------------------------------------------------------
# Deterministic parameter init (matches nn.Linear(64,64,bias=False) x6 + (64,3)).
# Weights are stored transposed relative to torch (in_features, out_features)
# so the kernel computes h @ W, equivalent to torch's x @ W.T.
# ----------------------------------------------------------------------------
def init_params(key, dtype=jnp.bfloat16):
    k_hid, k_out = jax.random.split(key)
    w_hid = (jax.random.normal(k_hid, (NUM_HIDDEN_LAYERS, 64, 64),
                               dtype=jnp.float32) * jnp.sqrt(2.0 / 64.0)).astype(dtype)
    w_out = (jax.random.normal(k_out, (64, 3),
                               dtype=jnp.float32) * jnp.sqrt(2.0 / 64.0)).astype(dtype)
    return w_hid, w_out


# Pure-JAX mirror of the kernel math (same bf16 MXU operands, f32 accumulation).
def nrc_core_ref(p, wi, n, alpha, beta, r, w_hid, w_out, ref_factor=True):
    x = build_mlp_input(p, wi, n, alpha, beta, r).astype(jnp.bfloat16)
    w_hid = w_hid.astype(jnp.bfloat16)
    w_out = w_out.astype(jnp.bfloat16)
    h = x
    for l in range(NUM_HIDDEN_LAYERS):
        acc = jnp.dot(h, w_hid[l], preferred_element_type=jnp.float32)
        h = jnp.maximum(acc, 0.0).astype(jnp.bfloat16)
    out = jnp.dot(h, w_out, preferred_element_type=jnp.float32)
    if ref_factor:
        scale = (x[:, ALPHA_COL:ALPHA_COL + 3].astype(jnp.float32)
                 + x[:, ALPHA_COL + 3:ALPHA_COL + 6].astype(jnp.float32))
        out = out * scale
    return out


if __name__ == "__main__":
    key = jax.random.PRNGKey(0)
    k_p, k_wi, k_n, k_a, k_b, k_r, k_w = jax.random.split(key, 7)

    B = 256  # small demo batch; tiled as 2 grid steps of 128 rows
    p = jax.random.uniform(k_p, (B, 3), dtype=jnp.float32)
    wi = jax.random.normal(k_wi, (B, 3), dtype=jnp.float32)
    n = jax.random.normal(k_n, (B, 3), dtype=jnp.float32)
    alpha = jax.random.uniform(k_a, (B, 3), dtype=jnp.float32)
    beta = jax.random.uniform(k_b, (B, 3), dtype=jnp.float32)
    r = jax.random.uniform(k_r, (B, 1), dtype=jnp.float32)

    w_hid, w_out = init_params(k_w)

    out = nrc_core_forward(p, wi, n, alpha, beta, r, w_hid, w_out,
                           ref_factor=True, block_b=128)
    out = jax.block_until_ready(out)
    assert out.shape == (B, 3), out.shape

    ref = nrc_core_ref(p, wi, n, alpha, beta, r, w_hid, w_out, ref_factor=True)
    assert jnp.allclose(out, ref, atol=1e-2, rtol=1e-2), \
        float(jnp.max(jnp.abs(out - ref)))

    print("KERNEL_OK")
</pallas_src>

<mosaic_0001>
module attributes {stable_mosaic.version = 11 : i64} {
  func.func @nrc_mlp_kernel(%arg0: i32, %arg1: memref<128x64xbf16, #tpu.memory_space<vmem>>, %arg2: memref<6x64x64xbf16, #tpu.memory_space<vmem>>, %arg3: memref<64x3xbf16, #tpu.memory_space<vmem>>, %arg4: memref<128x3xf32, #tpu.memory_space<vmem>>) attributes {dimension_semantics = [#tpu.dimension_semantics<parallel>], iteration_bounds = array<i64: 2>, scalar_prefetch = 0 : i64, scratch_operands = 0 : i64, tpu.core_type = #tpu.core_type<tc>, window_params = [{transform_indices = @transform_0, window_bounds = array<i64: 128, 64>}, {pipeline_mode = #tpu.pipeline_mode<synchronous>, transform_indices = @transform_1, window_bounds = array<i64: 6, 64, 64>}, {pipeline_mode = #tpu.pipeline_mode<synchronous>, transform_indices = @transform_2, window_bounds = array<i64: 64, 3>}, {transform_indices = @transform_3, window_bounds = array<i64: 128, 3>}]} {
    %c0 = arith.constant 0 : index
    %c0_0 = arith.constant 0 : index
    %0 = vector.load %arg1[%c0, %c0_0] : memref<128x64xbf16, #tpu.memory_space<vmem>>, vector<128x64xbf16>
    %c0_1 = arith.constant 0 : index
    %c0_2 = arith.constant 0 : index
    %c0_3 = arith.constant 0 : index
    %1 = vector.load %arg2[%c0_1, %c0_2, %c0_3] : memref<6x64x64xbf16, #tpu.memory_space<vmem>>, vector<1x64x64xbf16>
    %2 = vector.shape_cast %1 : vector<1x64x64xbf16> to vector<64x64xbf16>
    %cst = arith.constant dense<0.000000e+00> : vector<128x64xf32>
    %3 = tpu.matmul %0, %2, %cst {dimension_numbers = #tpu.dot_dimension_numbers<[1], [0], [0], [1], [0, 0, 1, 1], [], []>} : vector<128x64xbf16>, vector<64x64xbf16>, vector<128x64xf32> -> vector<128x64xf32>
    %cst_4 = arith.constant 0.000000e+00 : f32
    %4 = vector.broadcast %cst_4 : f32 to vector<128x64xf32>
    %5 = arith.maximumf %3, %4 : vector<128x64xf32>
    %6 = arith.truncf %5 : vector<128x64xf32> to vector<128x64xbf16>
    %c1 = arith.constant 1 : index
    %c0_5 = arith.constant 0 : index
    %c0_6 = arith.constant 0 : index
    %7 = vector.load %arg2[%c1, %c0_5, %c0_6] : memref<6x64x64xbf16, #tpu.memory_space<vmem>>, vector<1x64x64xbf16>
    %8 = vector.shape_cast %7 : vector<1x64x64xbf16> to vector<64x64xbf16>
    %cst_7 = arith.constant dense<0.000000e+00> : vector<128x64xf32>
    %9 = tpu.matmul %6, %8, %cst_7 {dimension_numbers = #tpu.dot_dimension_numbers<[1], [0], [0], [1], [0, 0, 1, 1], [], []>} : vector<128x64xbf16>, vector<64x64xbf16>, vector<128x64xf32> -> vector<128x64xf32>
    %cst_8 = arith.constant 0.000000e+00 : f32
    %10 = vector.broadcast %cst_8 : f32 to vector<128x64xf32>
    %11 = arith.maximumf %9, %10 : vector<128x64xf32>
    %12 = arith.truncf %11 : vector<128x64xf32> to vector<128x64xbf16>
    %c2 = arith.constant 2 : index
    %c0_9 = arith.constant 0 : index
    %c0_10 = arith.constant 0 : index
    %13 = vector.load %arg2[%c2, %c0_9, %c0_10] : memref<6x64x64xbf16, #tpu.memory_space<vmem>>, vector<1x64x64xbf16>
    %14 = vector.shape_cast %13 : vector<1x64x64xbf16> to vector<64x64xbf16>
    %cst_11 = arith.constant dense<0.000000e+00> : vector<128x64xf32>
    %15 = tpu.matmul %12, %14, %cst_11 {dimension_numbers = #tpu.dot_dimension_numbers<[1], [0], [0], [1], [0, 0, 1, 1], [], []>} : vector<128x64xbf16>, vector<64x64xbf16>, vector<128x64xf32> -> vector<128x64xf32>
    %cst_12 = arith.constant 0.000000e+00 : f32
    %16 = vector.broadcast %cst_12 : f32 to vector<128x64xf32>
    %17 = arith.maximumf %15, %16 : vector<128x64xf32>
    %18 = arith.truncf %17 : vector<128x64xf32> to vector<128x64xbf16>
    %c3 = arith.constant 3 : index
    %c0_13 = arith.constant 0 : index
    %c0_14 = arith.constant 0 : index
    %19 = vector.load %arg2[%c3, %c0_13, %c0_14] : memref<6x64x64xbf16, #tpu.memory_space<vmem>>, vector<1x64x64xbf16>
    %20 = vector.shape_cast %19 : vector<1x64x64xbf16> to vector<64x64xbf16>
    %cst_15 = arith.constant dense<0.000000e+00> : vector<128x64xf32>
    %21 = tpu.matmul %18, %20, %cst_15 {dimension_numbers = #tpu.dot_dimension_numbers<[1], [0], [0], [1], [0, 0, 1, 1], [], []>} : vector<128x64xbf16>, vector<64x64xbf16>, vector<128x64xf32> -> vector<128x64xf32>
    %cst_16 = arith.constant 0.000000e+00 : f32
    %22 = vector.broadcast %cst_16 : f32 to vector<128x64xf32>
    %23 = arith.maximumf %21, %22 : vector<128x64xf32>
    %24 = arith.truncf %23 : vector<128x64xf32> to vector<128x64xbf16>
    %c4 = arith.constant 4 : index
    %c0_17 = arith.constant 0 : index
    %c0_18 = arith.constant 0 : index
    %25 = vector.load %arg2[%c4, %c0_17, %c0_18] : memref<6x64x64xbf16, #tpu.memory_space<vmem>>, vector<1x64x64xbf16>
    %26 = vector.shape_cast %25 : vector<1x64x64xbf16> to vector<64x64xbf16>
    %cst_19 = arith.constant dense<0.000000e+00> : vector<128x64xf32>
    %27 = tpu.matmul %24, %26, %cst_19 {dimension_numbers = #tpu.dot_dimension_numbers<[1], [0], [0], [1], [0, 0, 1, 1], [], []>} : vector<128x64xbf16>, vector<64x64xbf16>, vector<128x64xf32> -> vector<128x64xf32>
    %cst_20 = arith.constant 0.000000e+00 : f32
    %28 = vector.broadcast %cst_20 : f32 to vector<128x64xf32>
    %29 = arith.maximumf %27, %28 : vector<128x64xf32>
    %30 = arith.truncf %29 : vector<128x64xf32> to vector<128x64xbf16>
    %c5 = arith.constant 5 : index
    %c0_21 = arith.constant 0 : index
    %c0_22 = arith.constant 0 : index
    %31 = vector.load %arg2[%c5, %c0_21, %c0_22] : memref<6x64x64xbf16, #tpu.memory_space<vmem>>, vector<1x64x64xbf16>
    %32 = vector.shape_cast %31 : vector<1x64x64xbf16> to vector<64x64xbf16>
    %cst_23 = arith.constant dense<0.000000e+00> : vector<128x64xf32>
    %33 = tpu.matmul %30, %32, %cst_23 {dimension_numbers = #tpu.dot_dimension_numbers<[1], [0], [0], [1], [0, 0, 1, 1], [], []>} : vector<128x64xbf16>, vector<64x64xbf16>, vector<128x64xf32> -> vector<128x64xf32>
    %cst_24 = arith.constant 0.000000e+00 : f32
    %34 = vector.broadcast %cst_24 : f32 to vector<128x64xf32>
    %35 = arith.maximumf %33, %34 : vector<128x64xf32>
    %36 = arith.truncf %35 : vector<128x64xf32> to vector<128x64xbf16>
    %c0_25 = arith.constant 0 : index
    %c0_26 = arith.constant 0 : index
    %37 = vector.load %arg3[%c0_25, %c0_26] : memref<64x3xbf16, #tpu.memory_space<vmem>>, vector<64x3xbf16>
    %cst_27 = arith.constant dense<0.000000e+00> : vector<128x3xf32>
    %38 = tpu.matmul %36, %37, %cst_27 {dimension_numbers = #tpu.dot_dimension_numbers<[1], [0], [0], [1], [0, 0, 1, 1], [], []>} : vector<128x64xbf16>, vector<64x3xbf16>, vector<128x3xf32> -> vector<128x3xf32>
    %39 = vector.extract_strided_slice %0 {offsets = [0, 56], sizes = [128, 3], strides = [1, 1]} : vector<128x64xbf16> to vector<128x3xbf16>
    %40 = arith.extf %39 : vector<128x3xbf16> to vector<128x3xf32>
    %41 = vector.extract_strided_slice %0 {offsets = [0, 59], sizes = [128, 3], strides = [1, 1]} : vector<128x64xbf16> to vector<128x3xbf16>
    %42 = arith.extf %41 : vector<128x3xbf16> to vector<128x3xf32>
    %43 = arith.addf %40, %42 : vector<128x3xf32>
    %44 = arith.mulf %38, %43 : vector<128x3xf32>
    %c0_28 = arith.constant 0 : index
    %c0_29 = arith.constant 0 : index
    %45 = vector.load %arg4[%c0_28, %c0_29] : memref<128x3xf32, #tpu.memory_space<vmem>>, vector<128x3xf32>
    tpu.vector_store %arg4[%c0_28, %c0_29], %44 {strides = array<i32>} : memref<128x3xf32, #tpu.memory_space<vmem>>, vector<128x3xf32>,
    return
  }
  func.func @transform_0(%arg0: i32) -> (i32, i32) {
    %c0_i32 = arith.constant 0 : i32
    %c0_i32_0 = arith.constant 0 : i32
    return %arg0, %c0_i32 : i32, i32
  }
  func.func @transform_1(%arg0: i32) -> (i32, i32, i32) {
    %c0_i32 = arith.constant 0 : i32
    %c0_i32_0 = arith.constant 0 : i32
    %c0_i32_1 = arith.constant 0 : i32
    %c0_i32_2 = arith.constant 0 : i32
    return %c0_i32, %c0_i32_0, %c0_i32_1 : i32, i32, i32
  }
  func.func @transform_2(%arg0: i32) -> (i32, i32) {
    %c0_i32 = arith.constant 0 : i32
    %c0_i32_0 = arith.constant 0 : i32
    %c0_i32_1 = arith.constant 0 : i32
    return %c0_i32, %c0_i32_0 : i32, i32
  }
  func.func @transform_3(%arg0: i32) -> (i32, i32) {
    %c0_i32 = arith.constant 0 : i32
    %c0_i32_0 = arith.constant 0 : i32
    return %arg0, %c0_i32 : i32, i32
  }
}

</mosaic_0001>

<bundles_post_ra>
// kernel: nrc_core_forward.1
= control target key start
LH: loop header
LB: loop body
LE: loop exit
PB: predicated region body
PF: predicated region fallthrough
CT: control target
= control target key end

     0   :  { %s2244_s12 = smov 0   ;;  %s2543_s0 = inlined_call_operand.vmem [shape: bf16[256,64], index: 0, kind: input, shape index: {}]   ;;  %s2544_s1 = inlined_call_operand.vmem [shape: bf16[6,64,64], index: 1, kind: input, shape index: {}]   ;;  %s2545_s2 = inlined_call_operand.vmem [shape: bf16[64,3], index: 2, kind: input, shape index: {}]   ;;  %s2546_s3 = inlined_call_operand.vmem [shape: f32[256,3], index: 3, kind: output, shape index: {}]  }
   0x1 LB: > { %s1701_s13 = sadd.s32 4294967295, %s2220_s12   ;;  %p1705_p0 = scmp.ge.s32.totalorder %s2220_s12, 1  ;;  %s2220_s12 = sphi %s2244_s12, %s13_s12  }
   0x2   : > { %p138_p1 = scmp.lt.s32.totalorder %s2220_s12, 3 }
   0x4   : > { %p139_p2 = pnand %p1705_p0, %p138_p1 }
   0x5   : > { %v2154_v0 = vld [vmem:[%s2544_s1] sm:$0xff] (!%p139_p2)   ;;  %s1706_s16 = sshll.u32 (!%p139_p2), %s1701_s13, 4  ;;  %v2155_v1 = vld [vmem:[%s2544_s1 + $0x8] sm:$0xff] (!%p139_p2)   ;;  %v2156_v2 = vld [vmem:[%s2544_s1 + $0x10] sm:$0xff] (!%p139_p2)   ;;  %vm263_vm0 = vcmask (!%p139_p2), 523264   ;;  %s2223_s26 = smov (!%p139_p2), 72  }
   0x6   : > { %142 = sbr.rel (%p139_p2) target bundleno = 1584 (0x630), region = 32  ;;  %p163_p3 = scmp.lt.s32.totalorder (!%p139_p2), %s1706_s16, 31  ;;  %1928 = vmatprep.subr.bf16.mxu0 (!%p139_p2), %v2154_v0  ;;  %2096 = vmatprep.subr.bf16.mxu1 (!%p139_p2), %v2154_v0  ;;  %v2157_v4 = vld [vmem:[%s2544_s1 + $0x18] sm:$0xff] (!%p139_p2)   ;;  %v2166_v10 = vld [vmem:[%s2544_s1 + $0x20] sm:$0xff] (!%p139_p2)   ;;  %v2167_v11 = vld [vmem:[%s2544_s1 + $0x28] sm:$0xff] (!%p139_p2)   ;;  %vm1628_vm1 = vcmask (!%p139_p2), 23552  }
   0x7   : > { %1929 = vmatpush3.bf16.msra.mxu0 (!%p139_p2), %v2154_v0  ;;  %2100 = vmatpush3.bf16.msra.mxu1 (!%p139_p2), %v2154_v0  ;;  %v2168_v14 = vld [vmem:[%s2544_s1 + $0x30] sm:$0xff] (!%p139_p2)   ;;  %v2169_v15 = vld [vmem:[%s2544_s1 + $0x38] sm:$0xff] (!%p139_p2)   ;;  %v2170_v16 = vld [vmem:[%s2544_s1 + $0x40] sm:$0xff] (!%p139_p2)  }
   0x8   : > { %1930 = vmatprep.subr.bf16.mxu0 (!%p139_p2), %v2155_v1  ;;  %2097 = vmatprep.subr.bf16.mxu1 (!%p139_p2), %v2155_v1  ;;  %v2171_v17 = vld [vmem:[%s2544_s1 + $0x48] sm:$0xff] (!%p139_p2)   ;;  %v2172_v58 = vld [vmem:[%s2544_s1 + $0x50] sm:$0xff] (!%p139_p2)   ;;  %v2173_v59 = vld [vmem:[%s2544_s1 + $0x58] sm:$0xff] (!%p139_p2)  }
   0x9   : > { %v2174_v60 = vld [vmem:[%s2544_s1 + $0x60] sm:$0xff] (!%p139_p2)   ;;  %v2175_v61 = vld [vmem:[%s2544_s1 + $0x68] sm:$0xff] (!%p139_p2)   ;;  %v2176_v62 = vld [vmem:[%s2544_s1 + $0x70] sm:$0xff] (!%p139_p2)  }
   0xb   : > { %1931 = vmatpush3.bf16.msra.mxu0 (!%p139_p2), %v2155_v1  ;;  %2101 = vmatpush3.bf16.msra.mxu1 (!%p139_p2), %v2155_v1 }
   0xc   : > { %1932 = vmatprep.subr.bf16.mxu0 (!%p139_p2), %v2156_v2  ;;  %2098 = vmatprep.subr.bf16.mxu1 (!%p139_p2), %v2156_v2 }
   0xd   : > { %s2548_s16 = smov (!%p163_p3, %s1706_s16), 31 }
   0xe   : > { %s1707_s21 = sshll.u32 %s2548_s16, 2  ;;  %s1709_s27 = sshll.u32 %s2548_s16, 3 }
   0xf   : > { %s166_s24 = scalar_lea.vmem %s2543_s0, %s1707_s21  ;;  %1933 = vmatpush3.bf16.msra.mxu0 %v2156_v2  ;;  %2102 = vmatpush3.bf16.msra.mxu1 %v2156_v2  ;;  %s2222_s21 = smov 125  }
  0x10   : > { %v2267_v3 = vld [vmem:[%s166_s24] sm:$0xff]   ;;  %v2274_v6 = vld [vmem:[%s166_s24 + $0x8] sm:$0xff]   ;;  %v2280_v8 = vld [vmem:[%s166_s24 + $0x10] sm:$0xff]   ;;  %1934 = vmatprep.subr.bf16.mxu0 %v2157_v4  ;;  %2099 = vmatprep.subr.bf16.mxu1 %v2157_v4  ;;  %s2506_s30 = scalar_lea.vmem %s2546_s3, %s1709_s27 }
  0x11   : > { %v2272_v5 = vld [vmem:[%s166_s24 + $0x20] sm:$0xff]   ;;  %v2276_v7 = vld [vmem:[%s166_s24 + $0x28] sm:$0xff]   ;;  %1936 = vmatprep.mubr.msk.bf16.mxu0 %vm263_vm0, %v2267_v3  ;;  %v2282_v9 = vld [vmem:[%s166_s24 + $0x30] sm:$0xff]  }
  0x12   : > { %1944 = vmatprep.mubr.msk.bf16.mxu1 %vm263_vm0, %v2272_v5  ;;  %v2292_v12 = vld [vmem:[%s166_s24 + $0x18] sm:$0xff]  }
  0x13   : > { %1935 = vmatpush3.bf16.msra.mxu0 %v2157_v4  ;;  %2103 = vmatpush3.bf16.msra.mxu1 %v2157_v4  ;;  %v2294_v13 = vld [vmem:[%s166_s24 + $0x38] sm:$0xff]  }
  0x14   : > { %1952 = vmatprep.subr.bf16.mxu1 %v2166_v10  ;;  %1976 = vmatprep.subr.bf16.mxu0 %v2170_v16 }
  0x16   : > { %1937 = vmatmul.mubr.msk.bf16.vlgmr.msra.gmra.mrb[0].mxu0 %vm263_vm0, %v2274_v6  ;;  %1945 = vmatmul.mubr.msk.bf16.vlgmr.msra.gmra.mrb[0].mxu1 %vm263_vm0, %v2276_v7 }
  0x17   : > { %1940 = vmatprep.mubr.msk.bf16.mxu0 %vm263_vm0, %v2280_v8  ;;  %1948 = vmatprep.mubr.msk.bf16.mxu1 %vm263_vm0, %v2282_v9 }
  0x18   : > { %1953 = vmatpush3.bf16.msra.mxu1 %v2166_v10  ;;  %1977 = vmatpush3.bf16.msra.mxu0 %v2170_v16 }
  0x19   : > { %1954 = vmatprep.subr.bf16.mxu1 %v2167_v11  ;;  %1978 = vmatprep.subr.bf16.mxu0 %v2171_v17 }
  0x1c   : > { %1955 = vmatpush3.bf16.msra.mxu1 %v2167_v11  ;;  %1979 = vmatpush3.bf16.msra.mxu0 %v2171_v17 }
  0x1d   : > { %1956 = vmatprep.subr.bf16.mxu1 %v2168_v14  ;;  %1980 = vmatprep.subr.bf16.mxu0 %v2172_v58 }
  0x1e   : > { %1941 = vmatmul.mubr.msk.bf16.gmra.mrb[4].mxu0 %vm263_vm0, %v2292_v12  ;;  %1949 = vmatmul.mubr.msk.bf16.gmra.mrb[4].mxu1 %vm263_vm0, %v2294_v13 }
  0x20   : > { %1957 = vmatpush3.bf16.msra.mxu1 %v2168_v14  ;;  %1981 = vmatpush3.bf16.msra.mxu0 %v2172_v58 }
  0x21   : > { %1958 = vmatprep.subr.bf16.mxu1 %v2169_v15  ;;  %1982 = vmatprep.subr.bf16.mxu0 %v2173_v59 }
  0x24   : > { %1959 = vmatpush3.bf16.msra.mxu1 %v2169_v15  ;;  %1983 = vmatpush3.bf16.msra.mxu0 %v2173_v59 }
  0x25   : > { %2000 = vmatprep.subr.bf16.mxu1 %v2174_v60 }
  0xe9   : > { %v1938_v18 = vpop.f32.mrb[0].mxu0  ;;  %v1946_v19 = vpop.f32.mrb[0].mxu1 }
  0xea   : > { %v322_v20 = vpop.f32.mrb[1].mxu0  ;;  %v395_v21 = vmax.f32 %v1946_v19, 0.0  ;;  %v354_v22 = vpop.f32.mrb[1].mxu1  ;;  %v387_v26 = vmax.f32 %v1938_v18, 0.0 }
  0xeb   : > { %v1939_v23 = vpop.f32.mrb[2].mxu0  ;;  %v393_v24 = vmax.f32 %v354_v22, 0.0  ;;  %v1947_v25 = vpop.f32.mrb[2].mxu1  ;;  %v385_v31 = vmax.f32 %v322_v20, 0.0 }
  0xec   : > { %v388_v27 = vmax.f32 %v1939_v23, 0.0  ;;  %v325_v28 = vpop.f32.mrb[3].mxu0  ;;  %v396_v29 = vmax.f32 %v1947_v25, 0.0  ;;  %v357_v30 = vpop.f32.mrb[3].mxu1 }
  0xed   : > { %v386_v32 = vmax.f32 %v325_v28, 0.0  ;;  %v394_v33 = vmax.f32 %v357_v30, 0.0 }
  0xee   : > { %v402_v34 = vpack.c.bf16 %v388_v27, %v387_v26  ;;  %v406_v35 = vpack.c.bf16 %v396_v29, %v395_v21 }
  0xef   : > { %v401_v36 = vpack.c.bf16 %v386_v32, %v385_v31  ;;  %v405_v37 = vpack.c.bf16 %v394_v33, %v393_v24 }
  0xf1   : > { %v1942_v38 = vpop.f32.mrb[4].mxu0  ;;  %1960 = vmatprep.mubr.msk.bf16.mxu1 %vm263_vm0, %v401_v36  ;;  %v1950_v39 = vpop.f32.mrb[4].mxu1 }
  0xf2   : > { %v338_v40 = vpop.f32.mrb[5].mxu0  ;;  %1961 = vmatmul.mubr.msk.bf16.vlgmr.msra.gmra.mrb[8].mxu1 %vm263_vm0, %v402_v34  ;;  %v399_v41 = vmax.f32 %v1950_v39, 0.0  ;;  %v370_v42 = vpop.f32.mrb[5].mxu1  ;;  %v391_v46 = vmax.f32 %v1942_v38, 0.0 }
  0xf3   : > { %v1943_v43 = vpop.f32.mrb[6].mxu0  ;;  %v397_v44 = vmax.f32 %v370_v42, 0.0  ;;  %v1951_v45 = vpop.f32.mrb[6].mxu1  ;;  %v389_v51 = vmax.f32 %v338_v40, 0.0  ;;  %2001 = vmatpush3.bf16.msra.mxu1 %v2174_v60 }
  0xf4   : > { %v392_v47 = vmax.f32 %v1943_v43, 0.0  ;;  %v341_v48 = vpop.f32.mrb[7].mxu0  ;;  %v400_v49 = vmax.f32 %v1951_v45, 0.0  ;;  %v373_v50 = vpop.f32.mrb[7].mxu1  ;;  %2002 = vmatprep.subr.bf16.mxu1 %v2175_v61 }
  0xf5   : > { %v390_v52 = vmax.f32 %v341_v48, 0.0  ;;  %v398_v53 = vmax.f32 %v373_v50, 0.0  ;;  %v2178_v48 = vld [vmem:[%s2544_s1 + $0x80] sm:$0xff]   ;;  %v2180_v50 = vld [vmem:[%s2544_s1 + $0x90] sm:$0xff]  }
  0xf6   : > { %v404_v54 = vpack.c.bf16 %v392_v47, %v391_v46  ;;  %v408_v55 = vpack.c.bf16 %v400_v49, %v399_v41  ;;  %v2177_v47 = vld [vmem:[%s2544_s1 + $0x78] sm:$0xff]   ;;  %v2179_v49 = vld [vmem:[%s2544_s1 + $0x88] sm:$0xff]   ;;  %2024 = vmatprep.subr.bf16.mxu0 %v2178_v48 }
  0xf7   : > { %v403_v56 = vpack.c.bf16 %v390_v52, %v389_v51  ;;  %v407_v57 = vpack.c.bf16 %v398_v53, %v397_v44  ;;  %2003 = vmatpush3.bf16.msra.mxu1 %v2175_v61 }
  0xf8   : > { %2004 = vmatprep.subr.bf16.mxu1 %v2176_v62 }
  0xf9   : > { %1964 = vmatprep.mubr.msk.bf16.mxu1 %vm263_vm0, %v403_v56 }
  0xfa   : > { %1965 = vmatmul.mubr.msk.bf16.gmra.mrb[12].mxu1 %vm263_vm0, %v404_v54 }
  0xfb   : > { %1968 = vmatprep.mubr.msk.bf16.mxu1 %vm263_vm0, %v405_v37  ;;  %2005 = vmatpush3.bf16.msra.mxu1 %v2176_v62 }
  0xfc   : > { %2006 = vmatprep.subr.bf16.mxu1 %v2177_v47 }
  0xff   : > { %2007 = vmatpush3.bf16.msra.mxu1 %v2177_v47 }
 0x102   : > { %1969 = vmatmul.mubr.msk.bf16.gmra.mrb[16].mxu1 %vm263_vm0, %v406_v35 }
 0x103   : > { %1972 = vmatprep.mubr.msk.bf16.mxu1 %vm263_vm0, %v407_v57 }
 0x10a   : > { %1973 = vmatmul.mubr.msk.bf16.gmra.mrb[20].mxu1 %vm263_vm0, %v408_v55 }
 0x1c5   : > { %v1962_v63 = vpop.f32.mrb[8].mxu1 }
 0x1c6   : > { %v500_v0 = vpop.f32.mrb[9].mxu1  ;;  %v565_v2 = vmax.f32 %v1962_v63, 0.0 }
 0x1c7   : > { %v1963_v1 = vpop.f32.mrb[10].mxu1  ;;  %v563_v11 = vmax.f32 %v500_v0, 0.0 }
 0x1c8   : > { %v566_v4 = vmax.f32 %v1963_v1, 0.0  ;;  %v503_v10 = vpop.f32.mrb[11].mxu1 }
 0x1c9   : > { %v564_v14 = vmax.f32 %v503_v10, 0.0 }
 0x1ca   : > { %v580_v15 = vpack.c.bf16 %v566_v4, %v565_v2 }
 0x1cb   : > { %v579_v16 = vpack.c.bf16 %v564_v14, %v563_v11 }
 0x1cd   : > { %v1966_v17 = vpop.f32.mrb[12].mxu1  ;;  %1984 = vmatprep.mubr.msk.bf16.mxu0 %vm263_vm0, %v579_v16 }
 0x1ce   : > { %v516_v18 = vpop.f32.mrb[13].mxu1  ;;  %1985 = vmatmul.mubr.msk.bf16.vlgmr.msra.gmra.mrb[8].mxu0 %vm263_vm0, %v580_v15  ;;  %v569_v20 = vmax.f32 %v1966_v17, 0.0 }
 0x1cf   : > { %v1967_v19 = vpop.f32.mrb[14].mxu1  ;;  %v567_v23 = vmax.f32 %v516_v18, 0.0  ;;  %2025 = vmatpush3.bf16.msra.mxu0 %v2178_v48 }
 0x1d0   : > { %v570_v21 = vmax.f32 %v1967_v19, 0.0  ;;  %v519_v22 = vpop.f32.mrb[15].mxu1  ;;  %2026 = vmatprep.subr.bf16.mxu0 %v2179_v49 }
 0x1d1   : > { %v568_v24 = vmax.f32 %v519_v22, 0.0 }
 0x1d2   : > { %v582_v25 = vpack.c.bf16 %v570_v21, %v569_v20 }
 0x1d3   : > { %v581_v26 = vpack.c.bf16 %v568_v24, %v567_v23  ;;  %2027 = vmatpush3.bf16.msra.mxu0 %v2179_v49 }
 0x1d4   : > { %2028 = vmatprep.subr.bf16.mxu0 %v2180_v50 }
 0x1d5   : > { %v1970_v27 = vpop.f32.mrb[16].mxu1  ;;  %1988 = vmatprep.mubr.msk.bf16.mxu0 %vm263_vm0, %v581_v26 }
 0x1d6   : > { %v532_v28 = vpop.f32.mrb[17].mxu1  ;;  %1989 = vmatmul.mubr.msk.bf16.gmra.mrb[12].mxu0 %vm263_vm0, %v582_v25  ;;  %v573_v30 = vmax.f32 %v1970_v27, 0.0 }
 0x1d7   : > { %v1971_v29 = vpop.f32.mrb[18].mxu1  ;;  %v571_v33 = vmax.f32 %v532_v28, 0.0  ;;  %2029 = vmatpush3.bf16.msra.mxu0 %v2180_v50 }
 0x1d8   : > { %v574_v31 = vmax.f32 %v1971_v29, 0.0  ;;  %v535_v32 = vpop.f32.mrb[19].mxu1 }
 0x1d9   : > { %v572_v34 = vmax.f32 %v535_v32, 0.0 }
 0x1da   : > { %v584_v35 = vpack.c.bf16 %v574_v31, %v573_v30 }
 0x1db   : > { %v583_v36 = vpack.c.bf16 %v572_v34, %v571_v33 }
 0x1dd   : > { %v1974_v37 = vpop.f32.mrb[20].mxu1  ;;  %1992 = vmatprep.mubr.msk.bf16.mxu0 %vm263_vm0, %v583_v36  ;;  %v2182_v36 = vld [vmem:[%s2544_s1 + $0xa0] sm:$0xff]  }
 0x1de   : > { %v548_v38 = vpop.f32.mrb[21].mxu1  ;;  %1993 = vmatmul.mubr.msk.bf16.gmra.mrb[16].mxu0 %vm263_vm0, %v584_v35  ;;  %v577_v40 = vmax.f32 %v1974_v37, 0.0  ;;  %v2181_v35 = vld [vmem:[%s2544_s1 + $0x98] sm:$0xff]   ;;  %v2183_v37 = vld [vmem:[%s2544_s1 + $0xa8] sm:$0xff]   ;;  %2048 = vmatprep.subr.bf16.mxu1 %v2182_v36 }
 0x1df   : > { %v1975_v39 = vpop.f32.mrb[22].mxu1  ;;  %v575_v43 = vmax.f32 %v548_v38, 0.0  ;;  %2030 = vmatprep.subr.bf16.mxu0 %v2181_v35  ;;  %v2184_v38 = vld [vmem:[%s2544_s1 + $0xb0] sm:$0xff]  }
 0x1e0   : > { %v578_v41 = vmax.f32 %v1975_v39, 0.0  ;;  %v551_v42 = vpop.f32.mrb[23].mxu1  ;;  %2031 = vmatpush3.bf16.msra.mxu0 %v2181_v35 }
 0x1e1   : > { %v576_v44 = vmax.f32 %v551_v42, 0.0 }
 0x1e2   : > { %v586_v45 = vpack.c.bf16 %v578_v41, %v577_v40 }
 0x1e3   : > { %v585_v46 = vpack.c.bf16 %v576_v44, %v575_v43 }
 0x1e5   : > { %1996 = vmatprep.mubr.msk.bf16.mxu0 %vm263_vm0, %v585_v46 }
 0x1e6   : > { %1997 = vmatmul.mubr.msk.bf16.gmra.mrb[20].mxu0 %vm263_vm0, %v586_v45 }
 0x2a1   : > { %v1986_v51 = vpop.f32.mrb[8].mxu0 }
 0x2a2   : > { %v678_v52 = vpop.f32.mrb[9].mxu0  ;;  %v743_v54 = vmax.f32 %v1986_v51, 0.0 }
 0x2a3   : > { %v1987_v53 = vpop.f32.mrb[10].mxu0  ;;  %v741_v57 = vmax.f32 %v678_v52, 0.0 }
 0x2a4   : > { %v744_v55 = vmax.f32 %v1987_v53, 0.0  ;;  %v681_v56 = vpop.f32.mrb[11].mxu0 }
 0x2a5   : > { %v742_v58 = vmax.f32 %v681_v56, 0.0 }
 0x2a6   : > { %v758_v59 = vpack.c.bf16 %v744_v55, %v743_v54 }
 0x2a7   : > { %v757_v60 = vpack.c.bf16 %v742_v58, %v741_v57 }
 0x2a9   : > { %v1990_v61 = vpop.f32.mrb[12].mxu0  ;;  %2008 = vmatprep.mubr.msk.bf16.mxu1 %vm263_vm0, %v757_v60 }
 0x2aa   : > { %v694_v62 = vpop.f32.mrb[13].mxu0  ;;  %2009 = vmatmul.mubr.msk.bf16.vlgmr.msra.gmra.mrb[24].mxu1 %vm263_vm0, %v758_v59  ;;  %v747_v0 = vmax.f32 %v1990_v61, 0.0 }
 0x2ab   : > { %v1991_v63 = vpop.f32.mrb[14].mxu0  ;;  %v745_v4 = vmax.f32 %v694_v62, 0.0  ;;  %2049 = vmatpush3.bf16.msra.mxu1 %v2182_v36  ;;  %v1460_v36 = vunpack.c.l.bf16 %v2272_v5 }
 0x2ac   : > { %v748_v1 = vmax.f32 %v1991_v63, 0.0  ;;  %v697_v2 = vpop.f32.mrb[15].mxu0  ;;  %2050 = vmatprep.subr.bf16.mxu1 %v2183_v37 }
 0x2ad   : > { %v746_v10 = vmax.f32 %v697_v2, 0.0 }
 0x2ae   : > { %v760_v11 = vpack.c.bf16 %v748_v1, %v747_v0 }
 0x2af   : > { %v759_v14 = vpack.c.bf16 %v746_v10, %v745_v4  ;;  %2051 = vmatpush3.bf16.msra.mxu1 %v2183_v37  ;;  %v1461_v37 = vunpack.c.h.bf16 %v2272_v5 }
 0x2b0   : > { %2052 = vmatprep.subr.bf16.mxu1 %v2184_v38 }
 0x2b1   : > { %v1994_v15 = vpop.f32.mrb[16].mxu0  ;;  %2012 = vmatprep.mubr.msk.bf16.mxu1 %vm263_vm0, %v759_v14 }
 0x2b2   : > { %v710_v16 = vpop.f32.mrb[17].mxu0  ;;  %2013 = vmatmul.mubr.msk.bf16.gmra.mrb[28].mxu1 %vm263_vm0, %v760_v11  ;;  %v751_v18 = vmax.f32 %v1994_v15, 0.0 }
 0x2b3   : > { %v1995_v17 = vpop.f32.mrb[18].mxu0  ;;  %v749_v21 = vmax.f32 %v710_v16, 0.0  ;;  %2053 = vmatpush3.bf16.msra.mxu1 %v2184_v38 }
 0x2b4   : > { %v752_v19 = vmax.f32 %v1995_v17, 0.0  ;;  %v713_v20 = vpop.f32.mrb[19].mxu0 }
 0x2b5   : > { %v750_v22 = vmax.f32 %v713_v20, 0.0 }
 0x2b6   : > { %v762_v23 = vpack.c.bf16 %v752_v19, %v751_v18 }
 0x2b7   : > { %v761_v24 = vpack.c.bf16 %v750_v22, %v749_v21 }
 0x2b9   : > { %v1998_v25 = vpop.f32.mrb[20].mxu0  ;;  %2016 = vmatprep.mubr.msk.bf16.mxu1 %vm263_vm0, %v761_v24  ;;  %v2186_v24 = vld [vmem:[%s2545_s2] sm:$0xff]  }
 0x2ba   : > { %v726_v26 = vpop.f32.mrb[21].mxu0  ;;  %2017 = vmatmul.mubr.msk.bf16.gmra.mrb[32].mxu1 %vm263_vm0, %v762_v23  ;;  %v755_v28 = vmax.f32 %v1998_v25, 0.0  ;;  %v2185_v23 = vld [vmem:[%s2544_s1 + $0xb8] sm:$0xff]   ;;  %v1452_v25 = vunpack.c.l.bf16 %v2267_v3  ;;  %2072 = vmatprep.subr.bf16.mxu0 %v2186_v24 }
 0x2bb   : > { %v1999_v27 = vpop.f32.mrb[22].mxu0  ;;  %v753_v31 = vmax.f32 %v726_v26, 0.0  ;;  %2054 = vmatprep.subr.bf16.mxu1 %v2185_v23  ;;  %v1453_v26 = vunpack.c.h.bf16 %v2267_v3 }
 0x2bc   : > { %v756_v29 = vmax.f32 %v1999_v27, 0.0  ;;  %v729_v30 = vpop.f32.mrb[23].mxu0  ;;  %2055 = vmatpush3.bf16.msra.mxu1 %v2185_v23  ;;  %v2187_v27 = vld [vmem:[%s2545_s2 + $0x8] sm:$0xff]  }
 0x2bd   : > { %v754_v32 = vmax.f32 %v729_v30, 0.0  ;;  %v1456_v30 = vunpack.c.l.bf16 %v2280_v8 }
 0x2be   : > { %v764_v33 = vpack.c.bf16 %v756_v29, %v755_v28  ;;  %v1454_v28 = vunpack.c.l.bf16 %v2274_v6  ;;  %v1455_v29 = vunpack.c.h.bf16 %v2274_v6 }
 0x2bf   : > { %v763_v34 = vpack.c.bf16 %v754_v32, %v753_v31  ;;  %v1457_v31 = vunpack.c.h.bf16 %v2280_v8  ;;  %v1458_v32 = vunpack.c.l.bf16 %v2292_v12 }
 0x2c0   : > { %v2119_v38 = vpack.i.bf16 %v1455_v29, %v1454_v28 }
 0x2c1   : > { %2020 = vmatprep.mubr.msk.bf16.mxu1 %vm263_vm0, %v763_v34  ;;  %v2114_v34 = vpack.i.bf16 %v1453_v26, %v1452_v25  ;;  %v2124_v35 = vpack.i.bf16 %v1457_v31, %v1456_v30 }
 0x2c2   : > { %2021 = vmatmul.mubr.msk.bf16.gmra.mrb[36].mxu1 %vm263_vm0, %v764_v33  ;;  %v1459_v33 = vunpack.c.h.bf16 %v2292_v12 }
 0x2c3   : > { %2115 = vrot.lane.b32.xlu0 %v2114_v34, %s2222_s21  ;;  %2125 = vrot.lane.b32.xlu1 %v2124_v35, %s2222_s21  ;;  %v1462_v34 = vunpack.c.l.bf16 %v2276_v7  ;;  %v1463_v35 = vunpack.c.h.bf16 %v2276_v7  ;;  %v1467_v7 = vunpack.c.h.bf16 %v2294_v13 }
 0x2c7   : > { %2120 = vrot.lane.b32.xlu0 %v2119_v38, %s2222_s21  ;;  %v2189_v38 = vld [vmem:[%s2545_s2 + $0x18] sm:$0xff]  }
 0x37d   : > { %v2010_v39 = vpop.f32.mrb[24].mxu1 }
 0x37e   : > { %v856_v40 = vpop.f32.mrb[25].mxu1  ;;  %v921_v42 = vmax.f32 %v2010_v39, 0.0  ;;  %v2188_v39 = vld [vmem:[%s2545_s2 + $0x10] sm:$0xff]  }
 0x37f   : > { %v2011_v41 = vpop.f32.mrb[26].mxu1  ;;  %v919_v45 = vmax.f32 %v856_v40, 0.0  ;;  %v2129_v40 = vpack.i.bf16 %v1459_v33, %v1458_v32 }
 0x380   : > { %v922_v43 = vmax.f32 %v2011_v41, 0.0  ;;  %v859_v44 = vpop.f32.mrb[27].mxu1  ;;  %v2134_v41 = vpack.i.bf16 %v1461_v37, %v1460_v36 }
 0x381   : > { %v920_v46 = vmax.f32 %v859_v44, 0.0  ;;  %2130 = vrot.lane.b32.xlu1 %v2129_v40, %s2222_s21  ;;  %v1464_v40 = vunpack.c.l.bf16 %v2282_v9 }
 0x382   : > { %v936_v47 = vpack.c.bf16 %v922_v43, %v921_v42  ;;  %2135 = vrot.lane.b32.xlu0 %v2134_v41, %s2222_s21  ;;  %v1465_v41 = vunpack.c.h.bf16 %v2282_v9 }
 0x383   : > { %v935_v48 = vpack.c.bf16 %v920_v46, %v919_v45 }
 0x385   : > { %v2014_v49 = vpop.f32.mrb[28].mxu1  ;;  %2032 = vmatprep.mubr.msk.bf16.mxu0 %vm263_vm0, %v935_v48 }
 0x386   : > { %v872_v50 = vpop.f32.mrb[29].mxu1  ;;  %2033 = vmatmul.mubr.msk.bf16.vlgmr.msra.gmra.mrb[24].mxu0 %vm263_vm0, %v936_v47  ;;  %v925_v52 = vmax.f32 %v2014_v49, 0.0 }
 0x387   : > { %v2015_v51 = vpop.f32.mrb[30].mxu1  ;;  %v923_v55 = vmax.f32 %v872_v50, 0.0  ;;  %2073 = vmatpush3.bf16.msra.mxu0 %v2186_v24 }
 0x388   : > { %v926_v53 = vmax.f32 %v2015_v51, 0.0  ;;  %v875_v54 = vpop.f32.mrb[31].mxu1  ;;  %2074 = vmatprep.subr.bf16.mxu0 %v2187_v27 }
 0x389   : > { %v924_v56 = vmax.f32 %v875_v54, 0.0 }
 0x38a   : > { %v938_v57 = vpack.c.bf16 %v926_v53, %v925_v52 }
 0x38b   : > { %v937_v58 = vpack.c.bf16 %v924_v56, %v923_v55  ;;  %2075 = vmatpush3.bf16.msra.mxu0 %v2187_v27 }
 0x38c   : > { %2076 = vmatprep.subr.bf16.mxu0 %v2188_v39 }
 0x38d   : > { %v2018_v59 = vpop.f32.mrb[32].mxu1  ;;  %2036 = vmatprep.mubr.msk.bf16.mxu0 %vm263_vm0, %v937_v58 }
 0x38e   : > { %v888_v60 = vpop.f32.mrb[33].mxu1  ;;  %2037 = vmatmul.mubr.msk.bf16.gmra.mrb[28].mxu0 %vm263_vm0, %v938_v57  ;;  %v929_v62 = vmax.f32 %v2018_v59, 0.0 }
 0x38f   : > { %v2019_v61 = vpop.f32.mrb[34].mxu1  ;;  %v927_v1 = vmax.f32 %v888_v60, 0.0  ;;  %2077 = vmatpush3.bf16.msra.mxu0 %v2188_v39  ;;  %v2139_v39 = vpack.i.bf16 %v1463_v35, %v1462_v34 }
 0x390   : > { %v930_v63 = vmax.f32 %v2019_v61, 0.0  ;;  %v891_v0 = vpop.f32.mrb[35].mxu1  ;;  %2078 = vmatprep.subr.bf16.mxu0 %v2189_v38 }
 0x391   : > { %v928_v2 = vmax.f32 %v891_v0, 0.0  ;;  %2140 = vrot.lane.b32.xlu1 %v2139_v39, %s2222_s21 }
 0x392   : > { %v940_v4 = vpack.c.bf16 %v930_v63, %v929_v62 }
 0x393   : > { %v939_v10 = vpack.c.bf16 %v928_v2, %v927_v1  ;;  %2079 = vmatpush3.bf16.msra.mxu0 %v2189_v38 }
 0x395   : > { %v2022_v11 = vpop.f32.mrb[36].mxu1  ;;  %2040 = vmatprep.mubr.msk.bf16.mxu0 %vm263_vm0, %v939_v10 }
 0x396   : > { %v904_v14 = vpop.f32.mrb[37].mxu1  ;;  %2041 = vmatmul.mubr.msk.bf16.gmra.mrb[32].mxu0 %vm263_vm0, %v940_v4  ;;  %v933_v16 = vmax.f32 %v2022_v11, 0.0 }
 0x397   : > { %v2023_v15 = vpop.f32.mrb[38].mxu1  ;;  %v931_v19 = vmax.f32 %v904_v14, 0.0 }
 0x398   : > { %v934_v17 = vmax.f32 %v2023_v15, 0.0  ;;  %v907_v18 = vpop.f32.mrb[39].mxu1 }
 0x399   : > { %v932_v20 = vmax.f32 %v907_v18, 0.0 }
 0x39a   : > { %v942_v21 = vpack.c.bf16 %v934_v17, %v933_v16 }
 0x39b   : > { %v941_v22 = vpack.c.bf16 %v932_v20, %v931_v19 }
 0x39d   : > { %2044 = vmatprep.mubr.msk.bf16.mxu0 %vm263_vm0, %v941_v22 }
 0x39e   : > { %2045 = vmatmul.mubr.msk.bf16.gmra.mrb[36].mxu0 %vm263_vm0, %v942_v21 }
 0x459   : > { %v2034_v42 = vpop.f32.mrb[24].mxu0 }
 0x45a   : > { %v1034_v43 = vpop.f32.mrb[25].mxu0  ;;  %v1099_v45 = vmax.f32 %v2034_v42, 0.0  ;;  %v2144_v42 = vpack.i.bf16 %v1465_v41, %v1464_v40 }
 0x45b   : > { %v2035_v44 = vpop.f32.mrb[26].mxu0  ;;  %v1097_v48 = vmax.f32 %v1034_v43, 0.0  ;;  %v1466_v43 = vunpack.c.l.bf16 %v2294_v13 }
 0x45c   : > { %v1100_v46 = vmax.f32 %v2035_v44, 0.0  ;;  %v1037_v47 = vpop.f32.mrb[27].mxu0  ;;  %2145 = vrot.lane.b32.xlu0 %v2144_v42, %s2222_s21 }
 0x45d   : > { %v1098_v49 = vmax.f32 %v1037_v47, 0.0  ;;  %v2149_v44 = vpack.i.bf16 %v1467_v7, %v1466_v43 }
 0x45e   : > { %v1114_v50 = vpack.c.bf16 %v1100_v46, %v1099_v45  ;;  %v2116_v45 = vpop.permute.xlu0 %2115  ;;  %v2126_v46 = vpop.permute.xlu1 %2125 }
 0x45f   : > { %v1113_v51 = vpack.c.bf16 %v1098_v49, %v1097_v48  ;;  %2150 = vrot.lane.b32.xlu1 %v2149_v44, %s2222_s21  ;;  %v2198_v47 = vadd.high.f32.bf16 %v1453_v26, %v2116_v45  ;;  %v2199_v48 = vadd.low.f32.bf16 %v1452_v25, %v2116_v45  ;;  %v2203_v3 = vadd.low.f32.bf16 %v1456_v30, %v2126_v46 }
 0x461   : > { %v2038_v52 = vpop.f32.mrb[28].mxu0  ;;  %2056 = vmatprep.mubr.msk.bf16.mxu1 %vm263_vm0, %v1113_v51  ;;  %1564 = vrot.lane.b32.xlu0 %v2199_v48, %s2223_s26  ;;  %v2202_v51 = vadd.high.f32.bf16 %v1457_v31, %v2126_v46 }
 0x462   : > { %v1050_v53 = vpop.f32.mrb[29].mxu0  ;;  %2057 = vmatmul.mubr.msk.bf16.vlgmr.msra.gmra.mrb[40].mxu1 %vm263_vm0, %v1114_v50  ;;  %v1103_v55 = vmax.f32 %v2038_v52, 0.0  ;;  %v2121_v9 = vpop.permute.xlu0 %2120 }
 0x463   : > { %v2039_v54 = vpop.f32.mrb[30].mxu0  ;;  %v1101_v58 = vmax.f32 %v1050_v53, 0.0  ;;  %1566 = vrot.lane.b32.xlu1 %v2198_v47, %s2223_s26  ;;  %v2131_v49 = vpop.permute.xlu1 %2130  ;;  %v2200_v13 = vadd.high.f32.bf16 %v1455_v29, %v2121_v9  ;;  %v2201_v50 = vadd.low.f32.bf16 %v1454_v28, %v2121_v9 }
 0x464   : > { %v1104_v56 = vmax.f32 %v2039_v54, 0.0  ;;  %v1053_v57 = vpop.f32.mrb[31].mxu0  ;;  %v2204_v26 = vadd.high.f32.bf16 %v1459_v33, %v2131_v49  ;;  %v2205_v29 = vadd.low.f32.bf16 %v1458_v32, %v2131_v49 }
 0x465   : > { %v1102_v59 = vmax.f32 %v1053_v57, 0.0  ;;  %1568 = vrot.lane.b32.xlu0 %v2201_v50, %s2223_s26 }
 0x466   : > { %v1116_v60 = vpack.c.bf16 %v1104_v56, %v1103_v55  ;;  %v2136_v25 = vpop.permute.xlu0 %2135 }
 0x467   : > { %v1115_v61 = vpack.c.bf16 %v1102_v59, %v1101_v58  ;;  %1570 = vrot.lane.b32.xlu1 %v2200_v13, %s2223_s26  ;;  %v2206_v6 = vadd.high.f32.bf16 %v1461_v37, %v2136_v25  ;;  %v2207_v8 = vadd.low.f32.bf16 %v1460_v36, %v2136_v25  ;;  %v2141_v12 = vpop.permute.xlu1 %2140 }
 0x468   : > { %v2208_v28 = vadd.high.f32.bf16 %v1463_v35, %v2141_v12  ;;  %v2209_v30 = vadd.low.f32.bf16 %v1462_v34, %v2141_v12 }
 0x469   : > { %v2042_v62 = vpop.f32.mrb[32].mxu0  ;;  %2060 = vmatprep.mubr.msk.bf16.mxu1 %vm263_vm0, %v1115_v61  ;;  %1572 = vrot.lane.b32.xlu0 %v2203_v3, %s2223_s26 }
 0x46a   : > { %v1066_v63 = vpop.f32.mrb[33].mxu0  ;;  %2061 = vmatmul.mubr.msk.bf16.gmra.mrb[44].mxu1 %vm263_vm0, %v1116_v60  ;;  %v1107_v1 = vmax.f32 %v2042_v62, 0.0 }
 0x46b   : > { %v2043_v0 = vpop.f32.mrb[34].mxu0  ;;  %v1105_v10 = vmax.f32 %v1066_v63, 0.0  ;;  %1574 = vrot.lane.b32.xlu1 %v2202_v51, %s2223_s26 }
 0x46c   : > { %v1108_v2 = vmax.f32 %v2043_v0, 0.0  ;;  %v1069_v4 = vpop.f32.mrb[35].mxu0 }
 0x46d   : > { %v1106_v11 = vmax.f32 %v1069_v4, 0.0  ;;  %1576 = vrot.lane.b32.xlu0 %v2205_v29, %s2223_s26 }
 0x46e   : > { %v1118_v14 = vpack.c.bf16 %v1108_v2, %v1107_v1 }
 0x46f   : > { %v1117_v15 = vpack.c.bf16 %v1106_v11, %v1105_v10  ;;  %1578 = vrot.lane.b32.xlu1 %v2204_v26, %s2223_s26 }
 0x471   : > { %v2046_v16 = vpop.f32.mrb[36].mxu0  ;;  %2064 = vmatprep.mubr.msk.bf16.mxu1 %vm263_vm0, %v1117_v15  ;;  %1580 = vrot.lane.b32.xlu0 %v2207_v8, %s2223_s26 }
 0x472   : > { %v1082_v17 = vpop.f32.mrb[37].mxu0  ;;  %2065 = vmatmul.mubr.msk.bf16.gmra.mrb[48].mxu1 %vm263_vm0, %v1118_v14  ;;  %v1111_v19 = vmax.f32 %v2046_v16, 0.0 }
 0x473   : > { %v2047_v18 = vpop.f32.mrb[38].mxu0  ;;  %v1109_v22 = vmax.f32 %v1082_v17, 0.0  ;;  %1582 = vrot.lane.b32.xlu1 %v2206_v6, %s2223_s26 }
 0x474   : > { %v1112_v20 = vmax.f32 %v2047_v18, 0.0  ;;  %v1085_v21 = vpop.f32.mrb[39].mxu0 }
 0x475   : > { %v1110_v23 = vmax.f32 %v1085_v21, 0.0  ;;  %1584 = vrot.lane.b32.xlu0 %v2209_v30, %s2223_s26 }
 0x476   : > { %v1120_v24 = vpack.c.bf16 %v1112_v20, %v1111_v19 }
 0x477   : > { %v1119_v27 = vpack.c.bf16 %v1110_v23, %v1109_v22  ;;  %1586 = vrot.lane.b32.xlu1 %v2208_v28, %s2223_s26 }
 0x479   : > { %2068 = vmatprep.mubr.msk.bf16.mxu1 %vm263_vm0, %v1119_v27 }
 0x47a   : > { %2069 = vmatmul.mubr.msk.bf16.gmra.mrb[52].mxu1 %vm263_vm0, %v1120_v24 }
 0x4ce   : > { %v2146_v31 = vpop.permute.xlu0 %2145 }
 0x4cf   : > { %v2210_v32 = vadd.high.f32.bf16 %v1465_v41, %v2146_v31  ;;  %v2211_v33 = vadd.low.f32.bf16 %v1464_v40, %v2146_v31 }
 0x4d1   : > { %v2151_v5 = vpop.permute.xlu1 %2150  ;;  %1588 = vrot.lane.b32.xlu0 %v2211_v33, %s2223_s26  ;;  %1590 = vrot.lane.b32.xlu1 %v2210_v32, %s2223_s26 }
 0x4d2   : > { %v2212_v37 = vadd.high.f32.bf16 %v1467_v7, %v2151_v5  ;;  %v2213_v52 = vadd.low.f32.bf16 %v1466_v43, %v2151_v5 }
 0x4d3   : > { %v1565_v45 = vpop.permute.xlu0 %1564 }
 0x4d5   : > { %1592 = vrot.lane.b32.xlu0 %v2213_v52, %s2223_s26  ;;  %1594 = vrot.lane.b32.xlu1 %v2212_v37, %s2223_s26  ;;  %v1567_v46 = vpop.permute.xlu1 %1566 }
 0x4d7   : > { %v1569_v47 = vpop.permute.xlu0 %1568 }
 0x4d9   : > { %v1571_v48 = vpop.permute.xlu1 %1570 }
 0x4db   : > { %v1573_v9 = vpop.permute.xlu0 %1572 }
 0x4dd   : > { %v1575_v49 = vpop.permute.xlu1 %1574 }
 0x4df   : > { %v1577_v13 = vpop.permute.xlu0 %1576 }
 0x4e1   : > { %v1579_v51 = vpop.permute.xlu1 %1578 }
 0x4e3   : > { %v1581_v28 = vpop.permute.xlu0 %1580 }
 0x4e5   : > { %v1583_v30 = vpop.permute.xlu1 %1582 }
 0x4e7   : > { %v1585_v37 = vpop.permute.xlu0 %1584 }
 0x535   : > { %v2058_v36 = vpop.f32.mrb[40].mxu1 }
 0x536   : > { %v1212_v53 = vpop.f32.mrb[41].mxu1  ;;  %v1277_v55 = vmax.f32 %v2058_v36, 0.0 }
 0x537   : > { %v2059_v54 = vpop.f32.mrb[42].mxu1  ;;  %v1275_v58 = vmax.f32 %v1212_v53, 0.0 }
 0x538   : > { %v1278_v56 = vmax.f32 %v2059_v54, 0.0  ;;  %v1215_v57 = vpop.f32.mrb[43].mxu1 }
 0x539   : > { %v1276_v59 = vmax.f32 %v1215_v57, 0.0 }
 0x53a   : > { %v1292_v60 = vpack.c.bf16 %v1278_v56, %v1277_v55  ;;  %v1587_v55 = vpop.permute.xlu1 %1586 }
 0x53b   : > { %v1291_v61 = vpack.c.bf16 %v1276_v59, %v1275_v58 }
 0x53d   : > { %v2062_v62 = vpop.f32.mrb[44].mxu1  ;;  %2080 = vmatprep.mubr.msk.bf16.mxu0 %vm263_vm0, %v1291_v61 }
 0x53e   : > { %v1228_v63 = vpop.f32.mrb[45].mxu1  ;;  %2081 = vmatmul.mubr.msk.bf16.vlgmr.msra.gmra.mrb[40].mxu0 %vm263_vm0, %v1292_v60  ;;  %v1281_v1 = vmax.f32 %v2062_v62, 0.0 }
 0x53f   : > { %v2063_v0 = vpop.f32.mrb[46].mxu1  ;;  %v1279_v10 = vmax.f32 %v1228_v63, 0.0 }
 0x540   : > { %v1282_v2 = vmax.f32 %v2063_v0, 0.0  ;;  %v1231_v4 = vpop.f32.mrb[47].mxu1 }
 0x541   : > { %v1280_v11 = vmax.f32 %v1231_v4, 0.0 }
 0x542   : > { %v1294_v14 = vpack.c.bf16 %v1282_v2, %v1281_v1 }
 0x543   : > { %v1293_v15 = vpack.c.bf16 %v1280_v11, %v1279_v10  ;;  %v1589_v57 = vpop.permute.xlu0 %1588  ;;  %v1591_v62 = vpop.permute.xlu1 %1590 }
 0x545   : > { %v2066_v16 = vpop.f32.mrb[48].mxu1  ;;  %2084 = vmatprep.mubr.msk.bf16.mxu0 %vm263_vm0, %v1293_v15 }
 0x546   : > { %v1244_v17 = vpop.f32.mrb[49].mxu1  ;;  %2085 = vmatmul.mubr.msk.bf16.gmra.mrb[44].mxu0 %vm263_vm0, %v1294_v14  ;;  %v1285_v19 = vmax.f32 %v2066_v16, 0.0 }
 0x547   : > { %v2067_v18 = vpop.f32.mrb[50].mxu1  ;;  %v1283_v22 = vmax.f32 %v1244_v17, 0.0  ;;  %v1593_v2 = vpop.permute.xlu0 %1592 }
 0x548   : > { %v1286_v20 = vmax.f32 %v2067_v18, 0.0  ;;  %v1247_v21 = vpop.f32.mrb[51].mxu1  ;;  %v1595_v10 = vpop.permute.xlu1 %1594 }
 0x549   : > { %v1284_v23 = vmax.f32 %v1247_v21, 0.0 }
 0x54a   : > { %v1296_v24 = vpack.c.bf16 %v1286_v20, %v1285_v19 }
 0x54b   : > { %v1295_v27 = vpack.c.bf16 %v1284_v23, %v1283_v22 }
 0x54d   : > { %v2070_v34 = vpop.f32.mrb[52].mxu1  ;;  %2088 = vmatprep.mubr.msk.bf16.mxu0 %vm263_vm0, %v1295_v27 }
 0x54e   : > { %v1260_v35 = vpop.f32.mrb[53].mxu1  ;;  %2089 = vmatmul.mubr.msk.bf16.gmra.mrb[48].mxu0 %vm263_vm0, %v1296_v24  ;;  %v1289_v39 = vmax.f32 %v2070_v34, 0.0 }
 0x54f   : > { %v2071_v38 = vpop.f32.mrb[54].mxu1  ;;  %v1287_v42 = vmax.f32 %v1260_v35, 0.0 }
 0x550   : > { %v1290_v40 = vmax.f32 %v2071_v38, 0.0  ;;  %v1263_v41 = vpop.f32.mrb[55].mxu1 }
 0x551   : > { %v1288_v43 = vmax.f32 %v1263_v41, 0.0 }
 0x552   : > { %v1298_v7 = vpack.c.bf16 %v1290_v40, %v1289_v39 }
 0x553   : > { %v1297_v44 = vpack.c.bf16 %v1288_v43, %v1287_v42 }
 0x555   : > { %2092 = vmatprep.mubr.msk.bf16.mxu0 %vm263_vm0, %v1297_v44 }
 0x556   : > { %2093 = vmatmul.mubr.msk.bf16.gmra.mrb[52].mxu0 %vm263_vm0, %v1298_v7 }
 0x611   : > { %v2082_v50 = vpop.f32.mrb[40].mxu0 }
 0x612   : > { %v1614_v3 = vmul.f32 %v2082_v50, %v1569_v47  ;;  %v1389_v25 = vpop.f32.mrb[41].mxu0 }
 0x613   : > { %v1612_v26 = vmul.f32 %v1565_v45, %v1389_v25  ;;  %v2083_v29 = vpop.f32.mrb[42].mxu0 }
 0x614   : > { %1631 = vst.msk [vmem:[%s2506_s30 + $0x10] sm:$0xff] %vm1628_vm1, %v1614_v3  ;;  %v1615_v6 = vmul.f32 %v2083_v29, %v1571_v48  ;;  %v1392_v8 = vpop.f32.mrb[43].mxu0 }
 0x615   : > { %1629 = vst.msk [vmem:[%s2506_s30] sm:$0xff] %vm1628_vm1, %v1612_v26  ;;  %v1613_v12 = vmul.f32 %v1567_v46, %v1392_v8 }
 0x616   : > { %1632 = vst.msk [vmem:[%s2506_s30 + $0x18] sm:$0xff] %vm1628_vm1, %v1615_v6 }
 0x617   : > { %1630 = vst.msk [vmem:[%s2506_s30 + $0x8] sm:$0xff] %vm1628_vm1, %v1613_v12 }
 0x619   : > { %v2086_v31 = vpop.f32.mrb[44].mxu0 }
 0x61a   : > { %v1618_v32 = vmul.f32 %v2086_v31, %v1577_v13  ;;  %v1405_v33 = vpop.f32.mrb[45].mxu0 }
 0x61b   : > { %v1616_v5 = vmul.f32 %v1573_v9, %v1405_v33  ;;  %v2087_v36 = vpop.f32.mrb[46].mxu0 }
 0x61c   : > { %1635 = vst.msk [vmem:[%s2506_s30 + $0x30] sm:$0xff] %vm1628_vm1, %v1618_v32  ;;  %v1619_v52 = vmul.f32 %v2087_v36, %v1579_v51  ;;  %v1408_v53 = vpop.f32.mrb[47].mxu0 }
 0x61d   : > { %1633 = vst.msk [vmem:[%s2506_s30 + $0x20] sm:$0xff] %vm1628_vm1, %v1616_v5  ;;  %v1617_v54 = vmul.f32 %v1575_v49, %v1408_v53 }
 0x61e   : > { %1636 = vst.msk [vmem:[%s2506_s30 + $0x38] sm:$0xff] %vm1628_vm1, %v1619_v52 }
 0x61f   : > { %1634 = vst.msk [vmem:[%s2506_s30 + $0x28] sm:$0xff] %vm1628_vm1, %v1617_v54 }
 0x621   : > { %v2090_v56 = vpop.f32.mrb[48].mxu0 }
 0x622   : > { %v1622_v58 = vmul.f32 %v2090_v56, %v1585_v37  ;;  %v1421_v59 = vpop.f32.mrb[49].mxu0 }
 0x623   : > { %v1620_v60 = vmul.f32 %v1581_v28, %v1421_v59  ;;  %v2091_v61 = vpop.f32.mrb[50].mxu0 }
 0x624   : > { %1639 = vst.msk [vmem:[%s2506_s30 + $0x50] sm:$0xff] %vm1628_vm1, %v1622_v58  ;;  %v1623_v63 = vmul.f32 %v2091_v61, %v1587_v55  ;;  %v1424_v0 = vpop.f32.mrb[51].mxu0 }
 0x625   : > { %1637 = vst.msk [vmem:[%s2506_s30 + $0x40] sm:$0xff] %vm1628_vm1, %v1620_v60  ;;  %v1621_v1 = vmul.f32 %v1583_v30, %v1424_v0 }
 0x626   : > { %1640 = vst.msk [vmem:[%s2506_s30 + $0x58] sm:$0xff] %vm1628_vm1, %v1623_v63 }
 0x627   : > { %1638 = vst.msk [vmem:[%s2506_s30 + $0x48] sm:$0xff] %vm1628_vm1, %v1621_v1 }
 0x629   : > { %v2094_v4 = vpop.f32.mrb[52].mxu0 }
 0x62a   : > { %v1626_v11 = vmul.f32 %v2094_v4, %v1593_v2  ;;  %v1437_v14 = vpop.f32.mrb[53].mxu0 }
 0x62b   : > { %v1624_v15 = vmul.f32 %v1589_v57, %v1437_v14  ;;  %v2095_v16 = vpop.f32.mrb[54].mxu0 }
 0x62c   : > { %1643 = vst.msk [vmem:[%s2506_s30 + $0x70] sm:$0xff] %vm1628_vm1, %v1626_v11  ;;  %v1627_v17 = vmul.f32 %v2095_v16, %v1595_v10  ;;  %v1440_v18 = vpop.f32.mrb[55].mxu0 }
 0x62d   : > { %1641 = vst.msk [vmem:[%s2506_s30 + $0x60] sm:$0xff] %vm1628_vm1, %v1624_v15  ;;  %v1625_v19 = vmul.f32 %v1591_v62, %v1440_v18 }
 0x62e   : > { %1644 = vst.msk [vmem:[%s2506_s30 + $0x78] sm:$0xff] %vm1628_vm1, %v1627_v17 }
 0x62f   : > { %1642 = vst.msk [vmem:[%s2506_s30 + $0x68] sm:$0xff] %vm1628_vm1, %v1625_v19 }
 0x630 PF: > { %s13_s12 = sadd.s32 1, %s2220_s12  }
 0x631   : > { %p10_p4 = scmp.ge.s32.totalorder %s13_s12, 4  }
 0x633   :  { %12 = sbr.rel (!%p10_p4) target bundleno = 1 (0x1), region = 67 }

</bundles_post_ra>
